<compile_context>
chip_gen: v5e
topology: v5e:2x2
jax: 0.10.0
libtpu: 0.0.40
codegen_flags: <defaults>
</compile_context>

<pallas_src>
import functools

import numpy as np
import jax
import jax.numpy as jnp
from jax.experimental import pallas as pl
from jax.experimental.pallas import tpu as pltpu


def _round_up(x, m):
    return ((x + m - 1) // m) * m


def _is_static_scalar(v):
    try:
        float(v)
        return True
    except Exception:  # traced value
        return False


def aee_kernel(*refs, r_block, static_scale):
    # refs (static_scale is None):
    #   scale_ref : SMEM (1,) f32
    # refs (always):
    #   flow_ref  : VMEM (1, 2, r_block, 128)   flow tile (native dtype)
    #   gt_ref    : VMEM (1, 2, r_block, 128)   gtflow tile (native dtype)
    #   mask_ref  : VMEM (1, r_block, 128)      event mask tile (native dtype)
    #   err_ref   : VMEM (1, 1, 8, 128) f32     resident sum of masked EPE
    #   valid_ref : VMEM (1, 1, 8, 128) f32     resident count of valid pixels
    #   outl_ref  : VMEM (1, 1, 8, 128) f32     resident count of outliers
    if static_scale is None:
        scale_ref, flow_ref, gt_ref, mask_ref, err_ref, valid_ref, outl_ref = refs
        s = scale_ref[0]
    else:
        flow_ref, gt_ref, mask_ref, err_ref, valid_ref, outl_ref = refs
        s = static_scale

    k = pl.program_id(2)

    @pl.when(k == 0)
    def _():
        err_ref[...] = jnp.zeros_like(err_ref)
        valid_ref[...] = jnp.zeros_like(valid_ref)
        outl_ref[...] = jnp.zeros_like(outl_ref)

    f = flow_ref[...].astype(jnp.float32)          # (1, 2, R, 128)
    g = gt_ref[...].astype(jnp.float32)
    m = mask_ref[...]                              # (1, R, 128), native dtype

    fx = f[0, 0] * s                               # (R, 128)
    fy = f[0, 1] * s
    gx = g[0, 0]
    gy = g[0, 1]

    ex = fx - gx
    ey = fy - gy
    err2 = ex * ex + ey * ey                       # squared endpoint error
    mag2 = fx * fx + fy * fy                       # squared flow magnitude

    # valid pixel: event mask set AND gtflow not exactly zero in both channels.
    # (Padded pixels have mask == 0, so they are never valid.)
    gt_zero = jnp.logical_and(gx == 0.0, gy == 0.0)
    valid = jnp.logical_and(m[0] != 0, jnp.logical_not(gt_zero))

    err = jnp.where(valid, jnp.sqrt(err2), 0.0)    # single sqrt per pixel (EUP)

    # Outlier test on squared values: equivalent to
    #   (error > 3.0) & (error > 0.05 * flow_mag)   for valid pixels;
    # invalid pixels can never be outliers (error forced to 0 above).
    outl = jnp.logical_and(
        valid, jnp.logical_and(err2 > 9.0, err2 > 0.0025 * mag2))

    # Reduce (R, 128) -> (8, 128) with pure vreg adds (no cross-lane XLU work);
    # accumulate into the resident lane-wide output blocks.
    nsub = r_block // 8
    err_c = jnp.sum(err.reshape(nsub, 8, 128), axis=0)
    valid_c = jnp.sum(valid.astype(jnp.float32).reshape(nsub, 8, 128), axis=0)
    outl_c = jnp.sum(outl.astype(jnp.float32).reshape(nsub, 8, 128), axis=0)

    err_ref[...] += err_c[None, None]
    valid_ref[...] += valid_c[None, None]
    outl_ref[...] += outl_c[None, None]


def aee_forward(flow_map, gtflow, event_mask, dt_gt, dt_input,
                flow_scaling=128.0, target_rows=1024, hw_shards=2):
    """flow_map / gtflow: [B, 2, H, W]; event_mask: [B, H, W] (last pass).

    Returns (AEE[B], percent_AEE[B]) matching AEE.forward() of the PyTorch
    module (percent_AEE uses the global outlier count, as in the original).
    """
    B, C, H, W = flow_map.shape
    assert C == 2
    HW = H * W

    # Sublane multiple: 8 for 32-bit dtypes, 16/32 for packed dtypes.
    sub_m = 8
    for a in (flow_map, gtflow, event_mask):
        sub_m = max(sub_m, 8 * (4 // max(1, jnp.dtype(a.dtype).itemsize)))

    P = max(1, int(hw_shards))
    r_raw = pl.cdiv(HW, 128)                      # HW rows of 128 lanes
    nt = max(P, pl.cdiv(r_raw, target_rows))      # total number of tiles
    nt = _round_up(nt, P)                         # evenly split across shards
    r_block = _round_up(pl.cdiv(r_raw, nt), sub_m)
    r_total = r_block * nt
    nk = nt // P
    hw_pad = r_total * 128

    # Free contiguous reshapes; zero-pad the tail only if needed (padded
    # pixels have zero mask/gtflow and are therefore never valid).
    flow = flow_map.reshape(B, 2, HW)
    gt = gtflow.reshape(B, 2, HW)
    mask = event_mask.reshape(B, HW)
    if hw_pad != HW:
        pad = hw_pad - HW
        flow = jnp.pad(flow, ((0, 0), (0, 0), (0, pad)))
        gt = jnp.pad(gt, ((0, 0), (0, 0), (0, pad)))
        mask = jnp.pad(mask, ((0, 0), (0, pad)))
    flow = flow.reshape(B, 2, r_total, 128)
    gt = gt.reshape(B, 2, r_total, 128)
    mask = mask.reshape(B, r_total, 128)

    # Bake the scale as a compile-time constant when possible; fall back to an
    # SMEM scalar operand when dt_gt / dt_input are traced.
    operands = []
    extra_specs = []
    if (_is_static_scalar(dt_gt) and _is_static_scalar(dt_input)
            and _is_static_scalar(flow_scaling)):
        static_scale = float(flow_scaling) * float(dt_gt) / float(dt_input)
    else:
        static_scale = None
        scale = (jnp.asarray(flow_scaling, jnp.float32)
                 * jnp.asarray(dt_gt, jnp.float32)
                 / jnp.asarray(dt_input, jnp.float32)).reshape(1)
        operands.append(scale)
        extra_specs.append(pl.BlockSpec(memory_space=pltpu.MemorySpace.SMEM))

    kernel = functools.partial(aee_kernel, r_block=r_block,
                               static_scale=static_scale)

    flow_spec = pl.BlockSpec((1, 2, r_block, 128),
                             lambda b, p, k: (b, 0, p * nk + k, 0))
    gt_spec = pl.BlockSpec((1, 2, r_block, 128),
                           lambda b, p, k: (b, 0, p * nk + k, 0))
    mask_spec = pl.BlockSpec((1, r_block, 128),
                             lambda b, p, k: (b, p * nk + k, 0))
    acc_spec = pl.BlockSpec((1, 1, 8, 128), lambda b, p, k: (b, p, 0, 0))

    acc_shape = jax.ShapeDtypeStruct((B, P, 8, 128), jnp.float32)

    err_acc, valid_acc, outl_acc = pl.pallas_call(
        kernel,
        out_shape=(acc_shape, acc_shape, acc_shape),
        grid=(B, P, nk),
        in_specs=extra_specs + [flow_spec, gt_spec, mask_spec],
        out_specs=(acc_spec, acc_spec, acc_spec),
        compiler_params=pltpu.CompilerParams(
            dimension_semantics=("parallel", "parallel", "arbitrary")),
    )(*operands, flow, gt, mask)

    # Tiny (B, P, 8, 128) -> scalar reductions; done once in the wrapper.
    err_sum = jnp.sum(err_acc, axis=(1, 2, 3))
    num_valid = jnp.sum(valid_acc, axis=(1, 2, 3))
    outl = jnp.sum(outl_acc, axis=(1, 2, 3))

    aee = err_sum / (num_valid + 1e-9)
    # NOTE: matches the original module — the outlier count is GLOBAL (summed
    # over all batches) but divided by the per-batch valid-pixel count.
    pct = jnp.sum(outl) / (num_valid + 1e-9)
    return aee, pct


def aee_reference(flow_map, gtflow, event_mask, dt_gt, dt_input,
                  flow_scaling=128.0):
    """Pure-numpy mirror of AEE.forward() for verification."""
    flow = flow_map * flow_scaling * (dt_gt / dt_input)
    flow_mag = np.sqrt((flow ** 2).sum(1))
    error = np.sqrt(((flow - gtflow) ** 2).sum(1))
    em = event_mask != 0
    gtm = ~((gtflow[:, 0] == 0.0) & (gtflow[:, 1] == 0.0))
    mask = em & gtm
    B = flow.shape[0]
    mask = mask.reshape(B, -1)
    error = error.reshape(B, -1) * mask
    flow_mag = flow_mag.reshape(B, -1) * mask
    num_valid = mask.sum(1)
    aee = error.sum(1) / (num_valid + 1e-9)
    outliers = (error > 3.0) & (error > 0.05 * flow_mag)
    pct = outliers.sum() / (num_valid + 1e-9)
    return aee.astype(np.float32), pct.astype(np.float32)


if __name__ == "__main__":
    B, H, W = 2, 16, 16
    flow_scaling = 128.0
    dt_gt, dt_input = 0.03, 0.01

    key = jax.random.PRNGKey(0)
    k1, k2, k3, k4 = jax.random.split(key, 4)

    flow_map = jax.random.normal(k1, (B, 2, H, W), dtype=jnp.float32) * 0.05
    gtflow = jax.random.normal(k2, (B, 2, H, W), dtype=jnp.float32) * 10.0
    # zero out some gtflow pixels (both channels) to exercise the gtflow mask
    gt_keep = (jax.random.uniform(k3, (B, 1, H, W)) > 0.3).astype(jnp.float32)
    gtflow = gtflow * gt_keep
    # binary event mask for the last pass
    event_mask = (jax.random.uniform(k4, (B, H, W)) > 0.5).astype(jnp.float32)

    aee, pct = aee_forward(flow_map, gtflow, event_mask, dt_gt, dt_input,
                           flow_scaling)
    aee = jax.block_until_ready(aee)
    pct = jax.block_until_ready(pct)

    aee_ref, pct_ref = aee_reference(np.asarray(flow_map), np.asarray(gtflow),
                                     np.asarray(event_mask), dt_gt, dt_input,
                                     flow_scaling)

    assert np.allclose(np.asarray(aee), aee_ref, rtol=1e-4, atol=1e-4), \
        (np.asarray(aee), aee_ref)
    assert np.allclose(np.asarray(pct), pct_ref, rtol=1e-4, atol=1e-4), \
        (np.asarray(pct), pct_ref)

    print("KERNEL_OK")
</pallas_src>

<mosaic_0001>
module attributes {stable_mosaic.version = 11 : i64} {
  func.func @aee_kernel(%arg0: i32, %arg1: i32, %arg2: i32, %arg3: memref<1x2x8x128xf32, #tpu.memory_space<vmem>>, %arg4: memref<1x2x8x128xf32, #tpu.memory_space<vmem>>, %arg5: memref<1x8x128xf32, #tpu.memory_space<vmem>>, %arg6: memref<1x1x8x128xf32, #tpu.memory_space<vmem>>, %arg7: memref<1x1x8x128xf32, #tpu.memory_space<vmem>>, %arg8: memref<1x1x8x128xf32, #tpu.memory_space<vmem>>) attributes {dimension_semantics = [#tpu.dimension_semantics<parallel>, #tpu.dimension_semantics<parallel>, #tpu.dimension_semantics<arbitrary>], iteration_bounds = array<i64: 2, 2, 1>, scalar_prefetch = 0 : i64, scratch_operands = 0 : i64, tpu.core_type = #tpu.core_type<tc>, window_params = [{transform_indices = @transform_0, window_bounds = array<i64: 1, 2, 8, 128>}, {transform_indices = @transform_1, window_bounds = array<i64: 1, 2, 8, 128>}, {transform_indices = @transform_2, window_bounds = array<i64: 1, 8, 128>}, {transform_indices = @transform_3, window_bounds = array<i64: 1, 1, 8, 128>}, {transform_indices = @transform_4, window_bounds = array<i64: 1, 1, 8, 128>}, {transform_indices = @transform_5, window_bounds = array<i64: 1, 1, 8, 128>}]} {
    %c0_i32 = arith.constant 0 : i32
    %0 = arith.cmpi eq, %arg2, %c0_i32 : i32
    %1 = arith.extui %0 : i1 to i32
    %c0_i32_0 = arith.constant 0 : i32
    %2 = arith.cmpi ne, %1, %c0_i32_0 : i32
    scf.if %2 {
      %cst_46 = arith.constant 0.000000e+00 : f32
      %68 = vector.broadcast %cst_46 : f32 to vector<1x1x8x128xf32>
      %c0_47 = arith.constant 0 : index
      %c0_48 = arith.constant 0 : index
      %c0_49 = arith.constant 0 : index
      %c0_50 = arith.constant 0 : index
      %69 = vector.load %arg6[%c0_47, %c0_48, %c0_49, %c0_50] : memref<1x1x8x128xf32, #tpu.memory_space<vmem>>, vector<1x1x8x128xf32>
      tpu.vector_store %arg6[%c0_47, %c0_48, %c0_49, %c0_50], %68 {strides = array<i32>} : memref<1x1x8x128xf32, #tpu.memory_space<vmem>>, vector<1x1x8x128xf32>,
      %cst_51 = arith.constant 0.000000e+00 : f32
      %70 = vector.broadcast %cst_51 : f32 to vector<1x1x8x128xf32>
      %c0_52 = arith.constant 0 : index
      %c0_53 = arith.constant 0 : index
      %c0_54 = arith.constant 0 : index
      %c0_55 = arith.constant 0 : index
      %71 = vector.load %arg7[%c0_52, %c0_53, %c0_54, %c0_55] : memref<1x1x8x128xf32, #tpu.memory_space<vmem>>, vector<1x1x8x128xf32>
      tpu.vector_store %arg7[%c0_52, %c0_53, %c0_54, %c0_55], %70 {strides = array<i32>} : memref<1x1x8x128xf32, #tpu.memory_space<vmem>>, vector<1x1x8x128xf32>,
      %cst_56 = arith.constant 0.000000e+00 : f32
      %72 = vector.broadcast %cst_56 : f32 to vector<1x1x8x128xf32>
      %c0_57 = arith.constant 0 : index
      %c0_58 = arith.constant 0 : index
      %c0_59 = arith.constant 0 : index
      %c0_60 = arith.constant 0 : index
      %73 = vector.load %arg8[%c0_57, %c0_58, %c0_59, %c0_60] : memref<1x1x8x128xf32, #tpu.memory_space<vmem>>, vector<1x1x8x128xf32>
      tpu.vector_store %arg8[%c0_57, %c0_58, %c0_59, %c0_60], %72 {strides = array<i32>} : memref<1x1x8x128xf32, #tpu.memory_space<vmem>>, vector<1x1x8x128xf32>,
    } else {
    }
    %c0 = arith.constant 0 : index
    %c0_1 = arith.constant 0 : index
    %c0_2 = arith.constant 0 : index
    %c0_3 = arith.constant 0 : index
    %3 = vector.load %arg3[%c0, %c0_1, %c0_2, %c0_3] : memref<1x2x8x128xf32, #tpu.memory_space<vmem>>, vector<1x2x8x128xf32>
    %c0_4 = arith.constant 0 : index
    %c0_5 = arith.constant 0 : index
    %c0_6 = arith.constant 0 : index
    %c0_7 = arith.constant 0 : index
    %4 = vector.load %arg4[%c0_4, %c0_5, %c0_6, %c0_7] : memref<1x2x8x128xf32, #tpu.memory_space<vmem>>, vector<1x2x8x128xf32>
    %c0_8 = arith.constant 0 : index
    %c0_9 = arith.constant 0 : index
    %c0_10 = arith.constant 0 : index
    %5 = vector.load %arg5[%c0_8, %c0_9, %c0_10] : memref<1x8x128xf32, #tpu.memory_space<vmem>>, vector<1x8x128xf32>
    %6 = vector.extract_strided_slice %3 {offsets = [0, 0, 0, 0], sizes = [1, 1, 8, 128], strides = [1, 1, 1, 1]} : vector<1x2x8x128xf32> to vector<1x1x8x128xf32>
    %7 = vector.shape_cast %6 : vector<1x1x8x128xf32> to vector<8x128xf32>
    %cst = arith.constant 3.840000e+02 : f32
    %8 = vector.broadcast %cst : f32 to vector<8x128xf32>
    %9 = arith.mulf %7, %8 : vector<8x128xf32>
    %10 = vector.extract_strided_slice %3 {offsets = [0, 1, 0, 0], sizes = [1, 1, 8, 128], strides = [1, 1, 1, 1]} : vector<1x2x8x128xf32> to vector<1x1x8x128xf32>
    %11 = vector.shape_cast %10 : vector<1x1x8x128xf32> to vector<8x128xf32>
    %cst_11 = arith.constant 3.840000e+02 : f32
    %12 = vector.broadcast %cst_11 : f32 to vector<8x128xf32>
    %13 = arith.mulf %11, %12 : vector<8x128xf32>
    %14 = vector.extract_strided_slice %4 {offsets = [0, 0, 0, 0], sizes = [1, 1, 8, 128], strides = [1, 1, 1, 1]} : vector<1x2x8x128xf32> to vector<1x1x8x128xf32>
    %15 = vector.shape_cast %14 : vector<1x1x8x128xf32> to vector<8x128xf32>
    %16 = vector.extract_strided_slice %4 {offsets = [0, 1, 0, 0], sizes = [1, 1, 8, 128], strides = [1, 1, 1, 1]} : vector<1x2x8x128xf32> to vector<1x1x8x128xf32>
    %17 = vector.shape_cast %16 : vector<1x1x8x128xf32> to vector<8x128xf32>
    %18 = arith.subf %9, %15 : vector<8x128xf32>
    %19 = arith.subf %13, %17 : vector<8x128xf32>
    %20 = arith.mulf %18, %18 : vector<8x128xf32>
    %21 = arith.mulf %19, %19 : vector<8x128xf32>
    %22 = arith.addf %20, %21 : vector<8x128xf32>
    %23 = arith.mulf %9, %9 : vector<8x128xf32>
    %24 = arith.mulf %13, %13 : vector<8x128xf32>
    %25 = arith.addf %23, %24 : vector<8x128xf32>
    %cst_12 = arith.constant 0.000000e+00 : f32
    %26 = vector.broadcast %cst_12 : f32 to vector<8x128xf32>
    %27 = arith.cmpf oeq, %15, %26 : vector<8x128xf32>
    %cst_13 = arith.constant 0.000000e+00 : f32
    %28 = vector.broadcast %cst_13 : f32 to vector<8x128xf32>
    %29 = arith.cmpf oeq, %17, %28 : vector<8x128xf32>
    %30 = arith.andi %27, %29 : vector<8x128xi1>
    %31 = vector.shape_cast %5 : vector<1x8x128xf32> to vector<8x128xf32>
    %cst_14 = arith.constant 0.000000e+00 : f32
    %32 = vector.broadcast %cst_14 : f32 to vector<8x128xf32>
    %33 = arith.cmpf one, %31, %32 : vector<8x128xf32>
    %cst_15 = arith.constant dense<true> : vector<8x128xi1>
    %34 = arith.xori %30, %cst_15 : vector<8x128xi1>
    %35 = arith.andi %33, %34 : vector<8x128xi1>
    %36 = math.sqrt %22 : vector<8x128xf32>
    %cst_16 = arith.constant 0.000000e+00 : f32
    %37 = vector.broadcast %cst_16 : f32 to vector<8x128xf32>
    %38 = arith.select %35, %36, %37 : vector<8x128xi1>, vector<8x128xf32>
    %cst_17 = arith.constant 9.000000e+00 : f32
    %39 = vector.broadcast %cst_17 : f32 to vector<8x128xf32>
    %40 = arith.cmpf ogt, %22, %39 : vector<8x128xf32>
    %cst_18 = arith.constant 2.500000e-03 : f32
    %41 = vector.broadcast %cst_18 : f32 to vector<8x128xf32>
    %42 = arith.mulf %41, %25 : vector<8x128xf32>
    %43 = arith.cmpf ogt, %22, %42 : vector<8x128xf32>
    %44 = arith.andi %40, %43 : vector<8x128xi1>
    %45 = arith.andi %35, %44 : vector<8x128xi1>
    %46 = vector.shape_cast %38 : vector<8x128xf32> to vector<1x8x128xf32>
    %cst_19 = arith.constant dense<0.000000e+00> : vector<8x128xf32>
    %47 = vector.multi_reduction <add>, %46, %cst_19 [0] : vector<1x8x128xf32> to vector<8x128xf32>
    %48 = arith.extui %35 : vector<8x128xi1> to vector<8x128xi32>
    %49 = arith.sitofp %48 : vector<8x128xi32> to vector<8x128xf32>
    %50 = vector.shape_cast %49 : vector<8x128xf32> to vector<1x8x128xf32>
    %cst_20 = arith.constant dense<0.000000e+00> : vector<8x128xf32>
    %51 = vector.multi_reduction <add>, %50, %cst_20 [0] : vector<1x8x128xf32> to vector<8x128xf32>
    %52 = arith.extui %45 : vector<8x128xi1> to vector<8x128xi32>
    %53 = arith.sitofp %52 : vector<8x128xi32> to vector<8x128xf32>
    %54 = vector.shape_cast %53 : vector<8x128xf32> to vector<1x8x128xf32>
    %cst_21 = arith.constant dense<0.000000e+00> : vector<8x128xf32>
    %55 = vector.multi_reduction <add>, %54, %cst_21 [0] : vector<1x8x128xf32> to vector<8x128xf32>
    %c0_22 = arith.constant 0 : index
    %c0_23 = arith.constant 0 : index
    %c0_24 = arith.constant 0 : index
    %c0_25 = arith.constant 0 : index
    %56 = vector.load %arg6[%c0_22, %c0_23, %c0_24, %c0_25] : memref<1x1x8x128xf32, #tpu.memory_space<vmem>>, vector<1x1x8x128xf32>
    %57 = vector.shape_cast %47 : vector<8x128xf32> to vector<1x1x8x128xf32>
    %58 = arith.addf %56, %57 : vector<1x1x8x128xf32>
    %c0_26 = arith.constant 0 : index
    %c0_27 = arith.constant 0 : index
    %c0_28 = arith.constant 0 : index
    %c0_29 = arith.constant 0 : index
    %59 = vector.load %arg6[%c0_26, %c0_27, %c0_28, %c0_29] : memref<1x1x8x128xf32, #tpu.memory_space<vmem>>, vector<1x1x8x128xf32>
    tpu.vector_store %arg6[%c0_26, %c0_27, %c0_28, %c0_29], %58 {strides = array<i32>} : memref<1x1x8x128xf32, #tpu.memory_space<vmem>>, vector<1x1x8x128xf32>,
    %c0_30 = arith.constant 0 : index
    %c0_31 = arith.constant 0 : index
    %c0_32 = arith.constant 0 : index
    %c0_33 = arith.constant 0 : index
    %60 = vector.load %arg7[%c0_30, %c0_31, %c0_32, %c0_33] : memref<1x1x8x128xf32, #tpu.memory_space<vmem>>, vector<1x1x8x128xf32>
    %61 = vector.shape_cast %51 : vector<8x128xf32> to vector<1x1x8x128xf32>
    %62 = arith.addf %60, %61 : vector<1x1x8x128xf32>
    %c0_34 = arith.constant 0 : index
    %c0_35 = arith.constant 0 : index
    %c0_36 = arith.constant 0 : index
    %c0_37 = arith.constant 0 : index
    %63 = vector.load %arg7[%c0_34, %c0_35, %c0_36, %c0_37] : memref<1x1x8x128xf32, #tpu.memory_space<vmem>>, vector<1x1x8x128xf32>
    tpu.vector_store %arg7[%c0_34, %c0_35, %c0_36, %c0_37], %62 {strides = array<i32>} : memref<1x1x8x128xf32, #tpu.memory_space<vmem>>, vector<1x1x8x128xf32>,
    %c0_38 = arith.constant 0 : index
    %c0_39 = arith.constant 0 : index
    %c0_40 = arith.constant 0 : index
    %c0_41 = arith.constant 0 : index
    %64 = vector.load %arg8[%c0_38, %c0_39, %c0_40, %c0_41] : memref<1x1x8x128xf32, #tpu.memory_space<vmem>>, vector<1x1x8x128xf32>
    %65 = vector.shape_cast %55 : vector<8x128xf32> to vector<1x1x8x128xf32>
    %66 = arith.addf %64, %65 : vector<1x1x8x128xf32>
    %c0_42 = arith.constant 0 : index
    %c0_43 = arith.constant 0 : index
    %c0_44 = arith.constant 0 : index
    %c0_45 = arith.constant 0 : index
    %67 = vector.load %arg8[%c0_42, %c0_43, %c0_44, %c0_45] : memref<1x1x8x128xf32, #tpu.memory_space<vmem>>, vector<1x1x8x128xf32>
    tpu.vector_store %arg8[%c0_42, %c0_43, %c0_44, %c0_45], %66 {strides = array<i32>} : memref<1x1x8x128xf32, #tpu.memory_space<vmem>>, vector<1x1x8x128xf32>,
    return
  }
  func.func @transform_0(%arg0: i32, %arg1: i32, %arg2: i32) -> (i32, i32, i32, i32) {
    %c1_i32 = arith.constant 1 : i32
    %0 = arith.muli %arg1, %c1_i32 : i32
    %1 = arith.addi %0, %arg2 : i32
    %c0_i32 = arith.constant 0 : i32
    %c0_i32_0 = arith.constant 0 : i32
    %c0_i32_1 = arith.constant 0 : i32
    return %arg0, %c0_i32, %1, %c0_i32_0 : i32, i32, i32, i32
  }
  func.func @transform_1(%arg0: i32, %arg1: i32, %arg2: i32) -> (i32, i32, i32, i32) {
    %c1_i32 = arith.constant 1 : i32
    %0 = arith.muli %arg1, %c1_i32 : i32
    %1 = arith.addi %0, %arg2 : i32
    %c0_i32 = arith.constant 0 : i32
    %c0_i32_0 = arith.constant 0 : i32
    %c0_i32_1 = arith.constant 0 : i32
    return %arg0, %c0_i32, %1, %c0_i32_0 : i32, i32, i32, i32
  }
  func.func @transform_2(%arg0: i32, %arg1: i32, %arg2: i32) -> (i32, i32, i32) {
    %c1_i32 = arith.constant 1 : i32
    %0 = arith.muli %arg1, %c1_i32 : i32
    %1 = arith.addi %0, %arg2 : i32
    %c0_i32 = arith.constant 0 : i32
    %c0_i32_0 = arith.constant 0 : i32
    return %arg0, %1, %c0_i32 : i32, i32, i32
  }
  func.func @transform_3(%arg0: i32, %arg1: i32, %arg2: i32) -> (i32, i32, i32, i32) {
    %c0_i32 = arith.constant 0 : i32
    %c0_i32_0 = arith.constant 0 : i32
    %c0_i32_1 = arith.constant 0 : i32
    return %arg0, %arg1, %c0_i32, %c0_i32_0 : i32, i32, i32, i32
  }
  func.func @transform_4(%arg0: i32, %arg1: i32, %arg2: i32) -> (i32, i32, i32, i32) {
    %c0_i32 = arith.constant 0 : i32
    %c0_i32_0 = arith.constant 0 : i32
    %c0_i32_1 = arith.constant 0 : i32
    return %arg0, %arg1, %c0_i32, %c0_i32_0 : i32, i32, i32, i32
  }
  func.func @transform_5(%arg0: i32, %arg1: i32, %arg2: i32) -> (i32, i32, i32, i32) {
    %c0_i32 = arith.constant 0 : i32
    %c0_i32_0 = arith.constant 0 : i32
    %c0_i32_1 = arith.constant 0 : i32
    return %arg0, %arg1, %c0_i32, %c0_i32_0 : i32, i32, i32, i32
  }
}

</mosaic_0001>

<bundles_post_ra>
// kernel: tpu_custom_call.1
= control target key start
LH: loop header
LB: loop body
LE: loop exit
PB: predicated region body
PF: predicated region fallthrough
CT: control target
= control target key end

     0   :  { %s1391_s0 = inlined_call_operand.hbm [shape: f32[2,2,16,128], index: 0, kind: input, shape index: {}]   ;;  %s1392_s1 = inlined_call_operand.hbm [shape: f32[2,2,16,128], index: 1, kind: input, shape index: {}]   ;;  %s1393_s2 = inlined_call_operand.hbm [shape: f32[2,16,128], index: 2, kind: input, shape index: {}]   ;;  %s1394_s3 = inlined_call_operand.hbm [shape: f32[2,2,8,128], index: 3, kind: output, shape index: {0}]   ;;  %s1395_s4 = inlined_call_operand.hbm [shape: f32[2,2,8,128], index: 4, kind: output, shape index: {1}]   ;;  %s1396_s5 = inlined_call_operand.hbm [shape: f32[2,2,8,128], index: 5, kind: output, shape index: {2}]  }
   0x1   :  { %1410 = sst [smem:[#allocation26_spill]] %s1392_s1 }
   0x2   :  { %1411 = sst [smem:[#allocation27_spill]] %s1394_s3 }
   0x3   :  { %1412 = sst [smem:[#allocation28_spill]] %s1395_s4 }
   0x4   :  { %1413 = sst [smem:[#allocation29_spill]] %s1396_s5 }
   0x5   :  { %11 = vsyncpa [#allocation3], 0 }
   0x6   :  { %13 = vsyncpa [#allocation3 + $0x1], 0 }
   0x7   :  { %14 = vsyncpa [#allocation6], 0 }
   0x8   :  { %16 = vsyncpa [#allocation6 + $0x1], 0 }
   0x9   :  { %17 = vsyncpa [#allocation4], 0 }
   0xa   :  { %19 = vsyncpa [#allocation4 + $0x1], 0 }
   0xb   :  { %20 = vsyncpa [#allocation10], 0 }
   0xc   :  { %22 = vsyncpa [#allocation10 + $0x1], 0  ;;  %s1142_s18 = smov 0   ;;  %s1144_s19 = smov 0  }
   0xd   :  { %s1146_s20 = smov 0   ;;  %s1148_s21 = smov 0  }
   0xe   :  { %s1150_s22 = smov 0   ;;  %s1152_s23 = smov 0  }
   0xf   :  { %s1154_s24 = smov 0   ;;  %s1156_s25 = smov 0  }
  0x10 LB: > { %1414 = sst [smem:[#allocation16_spill]] %s1077_s18  ;;  %s1183_s26 = sadd.s32 4294967295, %s1105_s25   ;;  %s1105_s25 = sphi %s1156_s25, %s28_s25   ;;  %s1101_s24 = sphi %s1154_s24, %s1453_s24   ;;  %s1097_s23 = sphi %s1152_s23, %s1452_s23   ;;  %s1093_s22 = sphi %s1150_s22, %s1451_s22   ;;  %s1089_s21 = sphi %s1148_s21, %s1450_s21   ;;  %s1085_s20 = sphi %s1146_s20, %s1445_s20   ;;  %s1081_s19 = sphi %s1144_s19, %s1449_s19   ;;  %s1077_s18 = sphi %s1142_s18, %s1448_s18  }
  0x11   : > { %1415 = sst [smem:[#allocation17_spill]] %s1085_s20  ;;  %s1397_s27 = sadd.s32 4294967294, %s1105_s25  }
  0x12   : > { %1416 = sst [smem:[#allocation18_spill]] %s1089_s21  ;;  %s43_s28 = sadd.s32 1, %s1097_s23 }
  0x13   : > { %1417 = sst [smem:[#allocation19_spill]] %s1093_s22  ;;  %s47_s29 = sadd.s32 1, %s1101_s24 }
  0x14   : > { %1418 = sst [smem:[#allocation20_spill]] %s1105_s25  ;;  %p45_p0 = scmp.ge.s32.totalorder %s43_s28, 2 }
  0x15   : > { %s58_s30 = sadd.s32 1, %s1085_s20  ;;  %p65_p1 = scmp.ne.s32.totalorder %s1085_s20, %s1081_s19 }
  0x16   : > { %p66_p2 = scmp.eq.s32.totalorder %s1105_s25, 0  ;;  %s1455_s28 = smov (%p45_p0, %s43_s28), 0 }
  0x17   : > { %1419 = sst [smem:[#allocation21_spill]] %s1455_s28  ;;  %s1457_s29 = smov (!%p45_p0, %s47_s29), %s1101_s24 }
  0x18   : > { %s54_s6 = ssub.s32 %s1097_s23, %s1455_s28  ;;  %p1197_p3 = por %p66_p2, %p65_p1 }
  0x19   : > { %p49_p4 = scmp.ge.s32.totalorder %s1457_s29, 2  ;;  %p71_p5 = scmp.ne.s32.totalorder %s1081_s19, %s1077_s18 }
  0x1a   : > { %p72_p6 = scmp.eq.s32.totalorder %s1183_s26, 0  ;;  %p157_p7 = scmp.eq.s32.totalorder %s1183_s26, 3 }
  0x1b   : > { %s1459_s29 = smov (%p49_p4, %s1457_s29), 0  ;;  %p163_p10 = scmp.eq.s32.totalorder %s1397_s27, 3 }
  0x1c   : > { %1421 = sst [smem:[#allocation22_spill]] %s1459_s29  ;;  %p1207_p8 = por %p72_p6, %p71_p5 }
  0x1d   : > { %p1211_p9 = por %p157_p7, %p65_p1  ;;  %s53_s10 = ssub.s32 %s1101_s24, %s1459_s29 }
  0x1e   : > { %s55_s11 = sor.u32 %s54_s6, %s53_s10  ;;  %p1219_p12 = por %p163_p10, %p71_p5 }
  0x1f   : > { %s1423_s9 = scalar_select %p1211_p9, 1, 0 }
  0x20   : > { %p56_p11 = scmp.eq.s32.totalorder %s55_s11, 0  ;;  %p780_p13 = scmp.lt.s32.totalorder %s1105_s25, 4 }
  0x21   : > { %1424 = sst [smem:[#allocation23_spill]] %s1423_s9  ;;  %s1225_s13 = sand.u32 1, %s1085_s20  }
  0x22   : > { %s1425_s12 = scalar_select %p1219_p12, 1, 0 }
  0x23   : > { %s1228_s14 = scalar_select %p56_p11, %s1085_s20, %s58_s30  }
  0x24   : > { %1426 = sst [smem:[#allocation24_spill]] %s1425_s12  ;;  %s719_s15 = sshll.u32 %s1225_s13, 4 }
  0x25   : > { %1427 = sst [smem:[#allocation25_spill]] %s1228_s14  ;;  %s720_s16 = sshll.u32 %s1101_s24, 2 }
  0x26   : > { %s248_s17 = sadd.s32 %s1097_s23, %s720_s16  ;;  %p1235_p0 = pnand %p780_p13, %p1197_p3 }
  0x27   : > { %s721_s6 = sshll.u32 %s248_s17, 3  ;;  %s263_s10 = sand.u32 1, %s1105_s25  }
  0x28   : > { %s1429_s1 = sld [smem:[#allocation26_spill]]  ;;  %s267_s12 = scalar_lea.vmem [#allocation5], %s719_s15 }
  0x29   : > { %s277_s18 = sshll.u32 %s267_s12, 4  ;;  %p728_p1 = scmp.ge.s32.totalorder %s1105_s25, 1  ;;  %s278_s18 = int_to_ptr.vmem [resolvable:$true] %s277_s18 }
  0x2a   : > { %s264_s7 = scalar_lea.sflag [#allocation6], %s263_s10  ;;  %s1107_s16 = smov 256  }
  0x2b   : > { %s1108_s14 = smov 128   ;;  %s1109_s17 = smov 8  }
  0x2c   : > { %p307_p2 = scmp.lt.s32.totalorder %s1105_s25, 5  ;;  %s250_s11 = scalar_lea.hbm %s1391_s0, %s721_s6 }
  0x2d   : > { %s251_s10 = sshll.u32 %s250_s11, 4  ;;  %s725_s3 = sshll.u32 %s1225_s13, 3  ;;  %s252_s10 = int_to_ptr.hbm [resolvable:$true] %s251_s10 }
  0x2e   : > { %s274_s28 = scalar_lea.hbm %s1429_s1, %s721_s6  ;;  %p1247_p3 = pnand %p728_p1, %p307_p2 }
  0x2f   : > { %s275_s30 = sshll.u32 %s274_s28, 4  ;;  %s243_s1 = scalar_lea.vmem [#allocation2], %s719_s15  ;;  %s276_s30 = int_to_ptr.hbm [resolvable:$true] %s275_s30 }
  0x30   : > { %766 = dma.hbm_to_vmem [thread:$0]  (!%p1235_p0), %s276_s30, 256, %s278_s18, %s264_s7, %s1107_s16, %s1108_s14, %s1109_s17  }
  0x31   : > { %s253_s20 = sshll.u32 %s243_s1, 4  ;;  %s240_s5 = scalar_lea.sflag [#allocation3], %s1225_s13  ;;  %s254_s20 = int_to_ptr.vmem [resolvable:$true] %s253_s20 }
  0x32   : > { %763 = dma.hbm_to_vmem [thread:$0]  (!%p1235_p0), %s252_s10, 256, %s254_s20, %s240_s5, %s1107_s16, %s1108_s14, %s1109_s17  }
  0x33   : > { %s726_s18 = sshll.u32 %s1101_s24, 1  ;;  %s291_s25 = scalar_lea.vmem [#allocation7], %s725_s3 }
  0x34   : > { %s296_s30 = sadd.s32 %s1097_s23, %s726_s18  ;;  %s302_s9 = sshll.u32 %s291_s25, 4  ;;  %s303_s9 = int_to_ptr.vmem [resolvable:$true] %s302_s9 }
  0x35   : > { %s727_s4 = sshll.u32 %s296_s30, 3  ;;  %311 = sbr.rel (%p1247_p3) target bundleno = 118 (0x76), region = 32 }
  0x36   : > { %s298_s28 = scalar_lea.hbm %s1393_s2, %s727_s4  ;;  %s1268_s1 = sand.u32 (!%p1247_p3), 1, %s1081_s19  }
  0x37   : > { %s300_s15 = sshll.u32 %s298_s28, 4  ;;  %s729_s3 = sshll.u32 (!%p1247_p3), %s1268_s1, 4  ;;  %s301_s15 = int_to_ptr.hbm [resolvable:$true] %s300_s15 }
  0x38   : > { %769 = dma.hbm_to_vmem [thread:$0]  (!%p1235_p0), %s301_s15, 128, %s303_s9, %s264_s7  }
  0x39   : > { %s314_s5 = scalar_lea.sflag (!%p1247_p3), [#allocation3], %s1268_s1  ;;  %s317_s20 = scalar_lea.vmem (!%p1247_p3), [#allocation2], %s729_s3 }
  0x3a   : > { %1060 = dma.done.wait (%p1207_p8), %s314_s5, 256  }
  0x3b   : > { %1062 = vsyncadd (%p1207_p8), %s314_s5, 4294967040  ;;  %s323_s4 = sand.u32 1, %s1183_s26   ;;  %s327_s22 = scalar_lea.vmem [#allocation5], %s729_s3 }
  0x3c   : > { %s324_s21 = scalar_lea.sflag [#allocation6], %s323_s4 }
  0x3d   : > { %1064 = dma.done.wait (%p1207_p8), %s324_s21, 384  }
  0x3e   : > { %1066 = vsyncadd (%p1207_p8), %s324_s21, 4294966912  ;;  %s1431_s25 = sld [smem:[#allocation19_spill]]  ;;  %s1284_s9 = sshll.u32 %s1268_s1, 3  ;;  %v395_v0 = vld [vmem:[%s317_s20] sm:$0xff]  ;;  %v396_v1 = vld [vmem:[%s317_s20 + $0x8] sm:$0xff]  ;;  %vm1110_vm4 = vmmov 1  }
  0x3f   : > { %s1432_s27 = sld [smem:[#allocation18_spill]]  ;;  %v397_v2 = vld [vmem:[%s327_s22] sm:$0xff]  ;;  %v398_v3 = vld [vmem:[%s327_s22 + $0x8] sm:$0xff]  ;;  %s337_s7 = scalar_lea.vmem [#allocation7], %s1284_s9  ;;  %v400_v5 = vmul.f32 384.0, %v395_v0  ;;  %v401_v6 = vmul.f32 384.0, %v396_v1 }
  0x40   : > { %v399_v4 = vld [vmem:[%s337_s7] sm:$0xff]  ;;  %vm410_vm0 = vcmp.eq.f32.partialorder %v397_v2, 0.0  ;;  %s1433_s17 = sld [smem:[#allocation28_spill]]  ;;  %vm411_vm1 = vcmp.eq.f32.partialorder %v398_v3, 0.0  ;;  %s377_s12 = scalar_lea.vmem [#allocation9], %s1284_s9  ;;  %v1111_v15 = vmov 0.0  }
  0x41   : > { %vm413_vm2 = vcmp.ne.f32.partialorder %v399_v4, 0.0  ;;  %v402_v7 = vsub.f32 %v400_v5, %v397_v2  ;;  %v403_v8 = vsub.f32 %v401_v6, %v398_v3  ;;  %vm412_vm3 = vmand %vm410_vm0, %vm411_vm1  ;;  %v407_v9 = vmul.f32 %v400_v5, %v400_v5  ;;  %s1296_s11 = sshll.u32 %s377_s12, 4  ;;  %s1437_s15 = sld [smem:[#allocation29_spill]]  ;;  %s492_s11 = int_to_ptr.vmem [resolvable:$true] %s1296_s11 }
  0x42   : > { %v408_v10 = vmul.f32 %v401_v6, %v401_v6  ;;  %vm414_vm5 = vmxor %vm412_vm3, %vm1110_vm4  ;;  %s1314_s5 = scalar_lea.sflag [#allocation10], %s323_s4 }
  0x43   : > { %v404_v11 = vmul.f32 %v402_v7, %v402_v7  ;;  %v405_v12 = vmul.f32 %v403_v8, %v403_v8  ;;  %vm1300_vm6 = vmand %vm413_vm2, %vm414_vm5 }
  0x44   : > { %s740_s13 = sshll.u32 %s1431_s25, 1  ;;  %v409_v14 = vadd.f32 %v408_v10, %v407_v9  ;;  %v735_v16 = vsel %vm1300_vm6, 1.0, %v1111_v15 }
  0x45   : > { %s471_s14 = sadd.s32 %s1432_s27, %s740_s13  ;;  %v406_v17 = vadd.f32 %v405_v12, %v404_v11  ;;  %446 = vst [vmem:[%s377_s12] sm:$0xff] %v735_v16 }
  0x46   : > { %s1288_s6 = sshll.u32 %s471_s14, 3  ;;  %v430_v18 = vmul.f32 0.0025, %v409_v14  ;;  %s963_s27 = scalar_lea.hbm %s1433_s17, 32 }
  0x47   : > { %s489_s29 = scalar_lea.hbm %s1433_s17, %s1288_s6  ;;  %s505_s3 = scalar_lea.hbm %s1437_s15, %s1288_s6  ;;  %851 = vrsqrt.f32 %v406_v17  ;;  %vm429_vm7 = vcmp.gt.f32.partialorder %v406_v17, 9.0 }
  0x48   : > { %s1298_s10 = sshll.u32 %s489_s29, 4  ;;  %vm431_vm8 = vcmp.gt.f32.partialorder %v406_v17, %v430_v18  ;;  %s494_s10 = int_to_ptr.hbm [resolvable:$true] %s1298_s10 }
  0x49   : > { %s957_s20 = sshra.s32 %s494_s10, 4  ;;  %s958_s20 = int_to_ptr.hbm [resolvable:$true] %s957_s20 }
  0x4a   : > { %s959_s21 = scalar_lea.hbm %s958_s20, 8  ;;  %p964_p7 = scmp.lt.s32.totalorder %s958_s20, %s1433_s17 }
  0x4b   : > { %p960_p4 = scmp.ne.s32.totalorder %s958_s20, %s959_s21  ;;  %p965_p8 = scmp.lt.s32.totalorder %s963_s27, %s959_s21 }
  0x4d   : > { %p961_p5 = pnand %p960_p4, %p1211_p9  ;;  %p966_p10 = por %p965_p8, %p964_p7 }
  0x4f   : > { %p962_p6 = pneg %p961_p5 }
  0x51   : > { %p967_p11 = pnand %p966_p10, %p962_p6 }
  0x53   : > { %970 = shalt.err (!%p967_p11)
}
  0x54   : > { %755 = dma.vmem_to_hbm [thread:$0]  (%p1211_p9), %s492_s11, 128, %s494_s10, %s1314_s5   ;;  %vm432_vm9 = vmand %vm429_vm7, %vm431_vm8  ;;  %v852_v20 = vpop.eup %851 }
  0x55   : > { %s384_s26 = scalar_lea.vmem [#allocation11], %s1284_s9  ;;  %s509_s7 = sshll.u32 %s505_s3, 4  ;;  %vm433_vm10 = vmand %vm1300_vm6, %vm432_vm9  ;;  %v417_v21 = vmul.f32 %v852_v20, %v406_v17  ;;  %s510_s7 = int_to_ptr.hbm [resolvable:$true] %s509_s7 }
  0x56   : > { %s507_s4 = sshll.u32 %s384_s26, 4  ;;  %v736_v19 = vsel %vm433_vm10, 1.0, %v1111_v15  ;;  %s985_s8 = sshra.s32 %s510_s7, 4  ;;  %s508_s4 = int_to_ptr.vmem [resolvable:$true] %s507_s4  ;;  %s986_s8 = int_to_ptr.hbm [resolvable:$true] %s985_s8 }
  0x57   : > { %449 = vst [vmem:[%s384_s26] sm:$0xff] %v736_v19  ;;  %s987_s16 = scalar_lea.hbm %s986_s8, 8  ;;  %s991_s11 = scalar_lea.hbm %s1437_s15, 32 }
  0x58   : > { %p988_p13 = scmp.ne.s32.totalorder %s986_s8, %s987_s16  ;;  %p992_p2 = scmp.lt.s32.totalorder %s986_s8, %s1437_s15 }
  0x59   : > { %p993_p3 = scmp.lt.s32.totalorder %s991_s11, %s987_s16 }
  0x5a   : > { %p989_p0 = pnand %p988_p13, %p1211_p9 }
  0x5b   : > { %p994_p4 = por %p993_p3, %p992_p2 }
  0x5c   : > { %p990_p1 = pneg %p989_p0 }
  0x5e   : > { %p995_p5 = pnand %p994_p4, %p990_p1 }
  0x60   : > { %998 = shalt.err (!%p995_p5)
}
  0x61   : > { %756 = dma.vmem_to_hbm [thread:$0]  (%p1211_p9), %s508_s4, 128, %s510_s7, %s1314_s5   ;;  %v418_v22 = vmul.f32 %v852_v20, %v417_v21  ;;  %vm423_vm11 = vcmp.eq.f32.partialorder %v406_v17, inf  ;;  %v426_v26 = vand.u32 2147483648, %v406_v17  ;;  %vm425_vm12 = vcmp.eq.f32.partialorder %v406_v17, 0.0 }
  0x62   : > { %s1438_s20 = sld [smem:[#allocation27_spill]]  ;;  %s370_s22 = scalar_lea.vmem [#allocation8], %s1284_s9 }
  0x63   : > { %v419_v23 = vmul.f32 0.5, %v418_v22  ;;  %s475_s25 = sshll.u32 %s370_s22, 4  ;;  %s451_s5 = scalar_lea.sflag [#allocation4], %s1268_s1  ;;  %s476_s25 = int_to_ptr.vmem [resolvable:$true] %s475_s25 }
  0x65   : > { %v420_v24 = vsub.f32 1.5, %v419_v23 }
  0x67   : > { %v421_v25 = vmul.f32 %v852_v20, %v420_v24 }
  0x68   : > { %s1439_s27 = smov %s1438_s20  ;;  %s473_s21 = scalar_lea.hbm %s1438_s20, %s1288_s6 }
  0x69   : > { %v422_v27 = vmul.f32 %v421_v25, %v406_v17  ;;  %s477_s13 = sshll.u32 %s473_s21, 4  ;;  %s1019_s9 = scalar_lea.hbm %s1439_s27, 32  ;;  %s478_s13 = int_to_ptr.hbm [resolvable:$true] %s477_s13 }
  0x6a   : > { %s1013_s14 = sshra.s32 %s478_s13, 4  ;;  %s1014_s14 = int_to_ptr.hbm [resolvable:$true] %s1013_s14 }
  0x6b   : > { %v424_v28 = vsel %vm423_vm11, %v406_v17, %v422_v27  ;;  %s1015_s26 = scalar_lea.hbm %s1014_s14, 8  ;;  %p1020_p10 = scmp.lt.s32.totalorder %s1014_s14, %s1439_s27 }
  0x6c   : > { %v427_v29 = vsel %vm425_vm12, %v426_v26, %v424_v28  ;;  %p1016_p6 = scmp.ne.s32.totalorder %s1014_s14, %s1015_s26  ;;  %p1021_p11 = scmp.lt.s32.totalorder %s1019_s9, %s1015_s26 }
  0x6d   : > { %v428_v30 = vsel %vm1300_vm6, %v427_v29, 0.0 }
  0x6e   : > { %443 = vst [vmem:[%s370_s22] sm:$0xff] %v428_v30  ;;  %p1017_p7 = pnand %p1016_p6, %p1211_p9  ;;  %p1022_p13 = por %p1021_p11, %p1020_p10 }
  0x70   : > { %p1018_p8 = pneg %p1017_p7 }
  0x72   : > { %p1023_p0 = pnand %p1022_p13, %p1018_p8 }
  0x74   : > { %1026 = shalt.err (!%p1023_p0)
}
  0x75   : > { %754 = dma.vmem_to_hbm [thread:$0]  (%p1211_p9), %s476_s25, 128, %s478_s13, %s451_s5  }
  0x76 PF: > { %s1440_s1 = sld [smem:[#allocation20_spill]] }
  0x77   : > { %s1441_s16 = sld [smem:[#allocation16_spill]] }
  0x7c   : > { %p781_p1 = scmp.ge.s32.totalorder %s1440_s1, 2 }
  0x7d   : > { %s521_s12 = sand.u32 1, %s1441_s16  }
  0x7e   : > { %p771_p2 = pnand %p781_p1, %p1219_p12  ;;  %s522_s11 = scalar_lea.sflag [#allocation4], %s521_s12 }
  0x80   : > { %p772_p3 = pneg %p771_p2 }
  0x82   : > { %1068 = dma.done.wait (%p772_p3), %s522_s11, 128  }
  0x83   : > { %1070 = vsyncadd (%p772_p3), %s522_s11, 4294967168  ;;  %s1443_s10 = sadd.s32 4294967294, %s1440_s1  }
  0x84   : > { %s531_s30 = sand.u32 1, %s1443_s10  }
  0x85   : > { %s532_s28 = scalar_lea.sflag [#allocation10], %s531_s30 }
  0x86   : > { %1072 = dma.done.wait (%p772_p3), %s532_s28, 256  }
  0x87   : > { %1074 = vsyncadd (%p772_p3), %s532_s28, 4294967040  ;;  %s28_s25 = sadd.s32 1, %s1440_s1   ;;  %s1444_s3 = sld [smem:[#allocation17_spill]] }
  0x88   : > { %p25_p9 = scmp.ge.s32.totalorder %s28_s25, 6   ;;  %s1445_s20 = sld [smem:[#allocation25_spill]] }
  0x89   : > { %s1446_s13 = sld [smem:[#allocation21_spill]]  ;;  %s1448_s18 = smov %s1081_s19 }
  0x8a   : > { %s1447_s5 = sld [smem:[#allocation22_spill]]  ;;  %s1450_s21 = smov %s1097_s23 }
  0x8b   : > { %s1451_s22 = smov %s1101_s24 }
  0x8c   :  { %27 = sbr.rel (!%p25_p9) target bundleno = 16 (0x10), region = 137 }
  0x8d   : > { %s1449_s19 = smov %s1444_s3 }
  0x8f   : > { %s1452_s23 = smov %s1446_s13 }
  0x90   : > { %s1453_s24 = smov %s1447_s5 }
  0x91   :  { %548 = vsyncpa [#allocation3], 1 }
  0x92   :  { %550 = vsyncpa [#allocation3 + $0x1], 1 }
  0x93   :  { %551 = vsyncpa [#allocation6], 1 }
  0x94   :  { %553 = vsyncpa [#allocation6 + $0x1], 1 }
  0x95   :  { %554 = vsyncpa [#allocation4], 1 }
  0x96   :  { %556 = vsyncpa [#allocation4 + $0x1], 1 }
  0x97   :  { %557 = vsyncpa [#allocation10], 1 }
  0x98   :  { %559 = vsyncpa [#allocation10 + $0x1], 1 }

</bundles_post_ra>
